<compile_context>
chip_gen: v7x
topology: tpu7x:2x2x1
jax: 0.10.0
libtpu: 0.0.40
codegen_flags: <defaults>
</compile_context>

<pallas_src>
import jax
import jax.numpy as jnp
from jax.experimental import pallas as pl
from jax.experimental.pallas import tpu as pltpu


# ---------------------------------------------------------------------------
# Fused broadcast bias-add kernel:  out = x + bias_row
# ---------------------------------------------------------------------------
def _add_bias_kernel(x_ref, b_ref, o_ref):
    # x block: (TR, TL); bias block: (1, TL).  Sublane broadcast is free.
    o_ref[...] = x_ref[...] + b_ref[...]


def _lane_tile(L, lane_target):
    # Full-extent block when the lane dim is small (exempt from the 128 rule);
    # otherwise a lane-aligned target (lane_target is a multiple of 128).
    return L if L <= lane_target else lane_target


def _row_tile(R, TL, block_bytes, itemsize):
    rows = max(1, block_bytes // (itemsize * TL))
    if rows >= R or R <= 8:
        return R                          # full extent -> exempt from 8-rule
    return max(8, (rows // 8) * 8)        # sublane-aligned


def add_bias(x, bias, *, block_bytes=4 << 20, lane_tile=2048,
             min_pallas_bytes=4 << 20, donate_x=False):
    """Fused y = x + bias.

    2-D x: (batch, C) + bias broadcast over rows.
    >=3-D x: (N, C, ...) channel bias broadcast over batch and spatial dims.
    """
    bias = jnp.asarray(bias, dtype=x.dtype).reshape(-1)
    C = bias.shape[0]
    itemsize = jnp.dtype(x.dtype).itemsize

    if x.ndim == 2:
        if x.shape[1] != C:
            raise ValueError(f"2-D input must be (batch, {C}); got {x.shape}")
        R, L = x.shape
        x2 = x
        brow = bias.reshape(1, L)                       # lane-dense bias row
        bias_bc = bias.reshape(1, C)                    # XLA-bypass broadcast
    elif x.ndim >= 3:
        if x.shape[1] != C:
            raise ValueError(f"expected channel dim {C} at axis 1; got {x.shape}")
        N = x.shape[0]
        hw = 1
        for d in x.shape[2:]:
            hw *= d
        R, L = N, C * hw
        # Fold all channels into the lane axis: lane-dense output stores and a
        # single (1, C*H*W) bias row (replaces the old (R,1) jnp.tile column).
        x2 = x.reshape(R, L)
        brow = jnp.repeat(bias, hw).reshape(1, L)
        bias_bc = bias.reshape((1, C) + (1,) * (x.ndim - 2))
    else:
        raise ValueError("add_bias expects a 2-D (batch, C) or >=3-D (N, C, ...) input")

    # Tiny or lane-sparse inputs: custom-call + grid bookkeeping would dwarf
    # any kernel benefit on every TPU generation -> plain fused XLA add.
    total_bytes = R * L * itemsize
    if total_bytes <= min_pallas_bytes or L < 128:
        return x + bias_bc

    TL = _lane_tile(L, lane_tile)
    TR = _row_tile(R, TL, block_bytes, itemsize)

    # v7x has 2 TensorCores: keep >=2 blocks along a "parallel" axis.
    if pl.cdiv(R, TR) == 1 and pl.cdiv(L, TL) == 1:
        if R >= 16:
            TR = max(8, ((-(-R // 2) + 7) // 8) * 8)
        elif L >= 256:
            TL = max(128, ((-(-L // 2) + 127) // 128) * 128)

    grid = (pl.cdiv(R, TR), pl.cdiv(L, TL))

    # Double-buffered x in + out, double-buffered bias row, plus headroom.
    blk = TR * TL * itemsize
    vmem_bytes = int(max(4 * blk + 2 * TL * itemsize + (4 << 20), 16 << 20))

    extra = {"input_output_aliases": {0: 0}} if donate_x else {}

    out2 = pl.pallas_call(
        _add_bias_kernel,
        out_shape=jax.ShapeDtypeStruct((R, L), x.dtype),
        grid=grid,
        in_specs=[
            pl.BlockSpec((TR, TL), lambda i, j: (i, j)),
            pl.BlockSpec((1, TL), lambda i, j: (0, j)),
        ],
        out_specs=pl.BlockSpec((TR, TL), lambda i, j: (i, j)),
        compiler_params=pltpu.CompilerParams(
            dimension_semantics=("parallel", "parallel"),
            vmem_limit_bytes=vmem_bytes),
        **extra,
    )(x2, brow)
    return out2.reshape(x.shape)


# ---------------------------------------------------------------------------
# AddBias module — forward() only returns the reshaped bias (matches PyTorch).
# Reshapes are metadata-only in JAX, so no kernel is launched here.
# ---------------------------------------------------------------------------
class AddBias:
    def __init__(self, bias):
        # nn.Parameter(bias.unsqueeze(1)) -> stored as (C, 1)
        self._bias = jnp.asarray(bias).reshape(-1, 1)

    def __call__(self, x):
        C = self._bias.shape[0]
        if x.ndim == 2:
            return self._bias.reshape(1, C)            # (1, C)
        return self._bias.reshape(1, C, 1, 1)          # (1, C, 1, 1)


if __name__ == "__main__":
    key = jax.random.PRNGKey(0)
    k_bias, k_x4, k_x2, k_bp4, k_xp4, k_bp2, k_xp2 = jax.random.split(key, 7)

    # ---- module forward semantics (returns reshaped bias only) -------------
    C = 4
    bias = jax.random.normal(k_bias, (C,), dtype=jnp.float32)
    module = AddBias(bias)

    x4 = jax.random.normal(k_x4, (2, C, 16, 16), dtype=jnp.float32)
    out4 = module(x4)
    assert out4.shape == (1, C, 1, 1), out4.shape
    assert jnp.allclose(out4.reshape(-1), bias), "4-D bias mismatch"

    x2 = jax.random.normal(k_x2, (2, C), dtype=jnp.float32)
    out2 = module(x2)
    assert out2.shape == (1, C), out2.shape
    assert jnp.allclose(out2.reshape(-1), bias), "2-D bias mismatch"

    # ---- fused add: tiny inputs take the XLA bypass -------------------------
    y4 = add_bias(x4, bias)
    jax.block_until_ready(y4)
    assert jnp.allclose(y4, x4 + out4), "bypass 4-D add mismatch"
    y2 = add_bias(x2, bias)
    jax.block_until_ready(y2)
    assert jnp.allclose(y2, x2 + out2), "bypass 2-D add mismatch"

    # ---- Pallas path: 4-D NCHW with non-multiple lane extent (masked tail) --
    Cb = 8
    bias_b = jax.random.normal(k_bp4, (Cb,), dtype=jnp.float32)
    xp4 = jax.random.normal(k_xp4, (4, Cb, 33, 33), dtype=jnp.float32)  # L = 8712
    yp4 = add_bias(xp4, bias_b, min_pallas_bytes=0,
                   block_bytes=256 * 1024, lane_tile=512)
    jax.block_until_ready(yp4)
    assert yp4.shape == xp4.shape
    assert jnp.allclose(yp4, xp4 + bias_b.reshape(1, Cb, 1, 1),
                        rtol=1e-6, atol=1e-6), "pallas 4-D add mismatch"

    # ---- Pallas path: 2-D with non-multiple row extent (masked tail) --------
    C2 = 256
    bias2 = jax.random.normal(k_bp2, (C2,), dtype=jnp.float32)
    xp2 = jax.random.normal(k_xp2, (300, C2), dtype=jnp.float32)
    yp2 = add_bias(xp2, bias2, min_pallas_bytes=0, block_bytes=64 * 1024)
    jax.block_until_ready(yp2)
    assert yp2.shape == xp2.shape
    assert jnp.allclose(yp2, xp2 + bias2[None, :],
                        rtol=1e-6, atol=1e-6), "pallas 2-D add mismatch"

    print("KERNEL_OK")
</pallas_src>

<mosaic_0001>
module attributes {stable_mosaic.version = 11 : i64} {
  func.func @_add_bias_kernel(%arg0: i32, %arg1: i32, %arg2: memref<4x512xf32, #tpu.memory_space<vmem>>, %arg3: memref<1x512xf32, #tpu.memory_space<vmem>>, %arg4: memref<4x512xf32, #tpu.memory_space<vmem>>) attributes {dimension_semantics = [#tpu.dimension_semantics<parallel>, #tpu.dimension_semantics<parallel>], iteration_bounds = array<i64: 1, 18>, scalar_prefetch = 0 : i64, scratch_operands = 0 : i64, tpu.core_type = #tpu.core_type<tc>, window_params = [{transform_indices = @transform_0, window_bounds = array<i64: 4, 512>}, {transform_indices = @transform_1, window_bounds = array<i64: 1, 512>}, {transform_indices = @transform_2, window_bounds = array<i64: 4, 512>}]} {
    %c0 = arith.constant 0 : index
    %c0_0 = arith.constant 0 : index
    %0 = vector.load %arg2[%c0, %c0_0] : memref<4x512xf32, #tpu.memory_space<vmem>>, vector<4x512xf32>
    %c0_1 = arith.constant 0 : index
    %c0_2 = arith.constant 0 : index
    %1 = vector.load %arg3[%c0_1, %c0_2] : memref<1x512xf32, #tpu.memory_space<vmem>>, vector<1x512xf32>
    %2 = vector.broadcast %1 : vector<1x512xf32> to vector<4x512xf32>
    %3 = arith.addf %0, %2 : vector<4x512xf32>
    %c0_3 = arith.constant 0 : index
    %c0_4 = arith.constant 0 : index
    %4 = vector.load %arg4[%c0_3, %c0_4] : memref<4x512xf32, #tpu.memory_space<vmem>>, vector<4x512xf32>
    tpu.vector_store %arg4[%c0_3, %c0_4], %3 {strides = array<i32>} : memref<4x512xf32, #tpu.memory_space<vmem>>, vector<4x512xf32>,
    return
  }
  func.func @transform_0(%arg0: i32, %arg1: i32) -> (i32, i32) {
    %c0_i32 = arith.constant 0 : i32
    return %arg0, %arg1 : i32, i32
  }
  func.func @transform_1(%arg0: i32, %arg1: i32) -> (i32, i32) {
    %c0_i32 = arith.constant 0 : i32
    %c0_i32_0 = arith.constant 0 : i32
    return %c0_i32, %arg1 : i32, i32
  }
  func.func @transform_2(%arg0: i32, %arg1: i32) -> (i32, i32) {
    %c0_i32 = arith.constant 0 : i32
    return %arg0, %arg1 : i32, i32
  }
}

</mosaic_0001>

<bundles_post_ra>
// kernel: tpu_custom_call.1
= control target key start
LH: loop header
LB: loop body
LE: loop exit
PB: predicated region body
PF: predicated region fallthrough
CT: control target
= control target key end

     0   :  { %7 = vsyncpa [#allocation3], 0  ;;  %s866_s0 = inlined_call_operand.hbm [shape: f32[4,8712], index: 0, kind: input, shape index: {}]   ;;  %s867_s1 = inlined_call_operand.hbm [shape: f32[1,8712], index: 1, kind: input, shape index: {}]   ;;  %s868_s2 = inlined_call_operand.hbm [shape: f32[4,8712], index: 2, kind: output, shape index: {}]  }
   0x1   :  { %9 = vsyncpa [#allocation3 + $0x1], 0 }
   0x2   :  { %10 = vsyncpa [#allocation6], 0 }
   0x3   :  { %12 = vsyncpa [#allocation6 + $0x1], 0 }
   0x4   :  { %13 = vsyncpa [#allocation4], 0 }
   0x5   :  { %15 = vsyncpa [#allocation4 + $0x1], 0  ;;  %s650_s9 = smov 0   ;;  %s652_s10 = smov 0  }
   0x6   :  { %s654_s11 = smov 0   ;;  %s656_s12 = smov 0  }
   0x7   :  { %s658_s13 = smov 0   ;;  %s660_s14 = smov 0  }
   0x8 LB: > { %s400_s15 = sadd.s32 4294967295, %s630_s14   ;;  %s401_s16 = sadd.s32 4294967294, %s630_s14   ;;  %s630_s14 = sphi %s660_s14, %s21_s14   ;;  %s626_s13 = sphi %s658_s13, %s883_s13   ;;  %s622_s12 = sphi %s656_s12, %s882_s12   ;;  %s618_s11 = sphi %s654_s11, %s881_s11   ;;  %s614_s10 = sphi %s652_s10, %s880_s10   ;;  %s610_s9 = sphi %s650_s9, %s879_s9  }
   0x9   : > { %s30_s17 = sadd.s32 1, %s626_s13  ;;  %s42_s18 = sadd.s32 1, %s618_s11 }
   0xa   : > { %p31_p0 = scmp.ge.s32.totalorder %s30_s17, 18  ;;  %p49_p1 = scmp.ne.s32.totalorder %s618_s11, %s614_s10 }
   0xb   : > { %p50_p2 = scmp.eq.s32.totalorder %s630_s14, 0  ;;  %p55_p3 = scmp.ne.s32.totalorder %s614_s10, %s610_s9 }
   0xc   : > { %s885_s17 = smov (%p31_p0, %s30_s17), 0  ;;  %p56_p5 = scmp.eq.s32.totalorder %s400_s15, 0 }
   0xd   : > { %p691_p4 = por %p50_p2, %p49_p1  ;;  %s38_s20 = ssub.s32 %s626_s13, %s885_s17 }
   0xe   : > { %p107_p6 = scmp.eq.s32.totalorder %s400_s15, 17  ;;  %p40_p7 = scmp.eq.s32.totalorder %s38_s20, 0 }
   0xf   : > { %s871_s19 = scalar_select %p691_p4, 1, 0 }
  0x10   : > { %p697_p8 = por %p56_p5, %p55_p3  ;;  %p701_p9 = por %p107_p6, %p49_p1 }
  0x11   : > { %p113_p10 = scmp.eq.s32.totalorder %s401_s16, 17  ;;  %p403_p12 = scmp.ge.s32.totalorder %s630_s14, 18 }
  0x12   : > { %s872_s21 = scalar_select %p697_p8, 1, 0 }
  0x13   : > { %s873_s22 = scalar_select %p701_p9, 1, 0 }
  0x14   : > { %s706_s23 = scalar_select %p40_p7, %s618_s11, %s42_s18  }
  0x15   : > { %p708_p11 = por %p113_p10, %p55_p3  ;;  %129 = sbr.rel (%p403_p12) target bundleno = 98 (0x62), region = 16 }
  0x17   : > { %s874_s24 = scalar_select %p708_p11, 1, 0 }
  0x1c   : > { %132 = sbr.rel (!%p691_p4) target bundleno = 62 (0x3e), region = 20  ;;  %s133_s25 = sand.u32 (%p691_p4), 1, %s618_s11  }
  0x1d   : > { %s405_s26 = sshll.u32 (%p691_p4), %s626_s13, 2  ;;  %s404_s27 = sshll.u32 (%p691_p4), %s133_s25, 4 }
  0x1e   : > { %s139_s28 = ssub.s32 (%p691_p4), 69, %s405_s26  ;;  %s720_s3 = scalar_lea.sflag (%p691_p4), [#allocation3], %s133_s25 }
  0x1f   : > { %p140_p13 = scmp.lt.s32.totalorder (%p691_p4), %s139_s28, 4  ;;  %s137_s4 = scalar_lea.vmem (%p691_p4), [#allocation2], %s404_s27 }
  0x23   : > { %s887_s28 = smov (!%p140_p13, %s139_s28), 4 }
  0x24   : > { %s717_s29 = sshll.u32 %s887_s28, 6 }
  0x25   : > { %s144_s30 = ssub.s32 256, %s717_s29 }
  0x26   : > { %145 = vsyncadd %s720_s3, %s144_s30  ;;  %p407_p0 = scmp.ne.s32.totalorder %s717_s29, 0  ;;  %s429_s5 = sshll.u32 %s626_s13, 8 }
  0x27   : > { %s728_s8 = scalar_lea.hbm %s866_s0, %s429_s5  ;;  %s153_s15 = sshll.u32 %s137_s4, 4  ;;  %s154_s15 = int_to_ptr.vmem [resolvable:$true] %s153_s15 }
  0x28   : > { %s488_s16 = scalar_lea.hbm %s728_s8, %s717_s29  ;;  %s492_s25 = scalar_lea.hbm %s866_s0, 4416 }
  0x29   : > { %p489_p1 = scmp.ne.s32.totalorder %s728_s8, %s488_s16  ;;  %p493_p5 = scmp.lt.u32.totalorder %s728_s8, %s866_s0 }
  0x2a   : > { %p494_p6 = scmp.lt.u32.totalorder %s492_s25, %s488_s16  ;;  %p496_p10 = scmp.lt.u32.totalorder %s488_s16, %s728_s8 }
  0x2b   : > { %p490_p2 = pnand %p489_p1, %p407_p0 }
  0x2c   : > { %p495_p7 = por %p494_p6, %p493_p5 }
  0x2d   : > { %p491_p3 = pneg %p490_p2 }
  0x2e   : > { %p497_p12 = por %p496_p10, %p495_p7 }
  0x30   : > { %p498_p13 = pnand %p497_p12, %p491_p3 }
  0x32   : > { %501 = shalt.err (!%p498_p13)
}
  0x33   : > { %s502_s28 = scalar_lea.vmem %s154_s15, %s717_s29  ;;  %s632_s30 = smov [#allocation2]  }
  0x34   : > { %p503_p11 = scmp.ne.s32.totalorder %s154_s15, %s502_s28  ;;  %s506_s4 = sshll.u32 %s632_s30, 4  ;;  %s507_s4 = int_to_ptr.vmem [resolvable:$false] %s506_s4 }
  0x35   : > { %s508_s5 = scalar_lea.vmem %s507_s4, 512  ;;  %p509_p9 = scmp.lt.s32.totalorder %s154_s15, %s507_s4 }
  0x36   : > { %p504_p1 = pnand %p503_p11, %p407_p0  ;;  %p510_p8 = scmp.lt.s32.totalorder %s508_s5, %s502_s28 }
  0x38   : > { %p505_p2 = pneg %p504_p1  ;;  %p511_p4 = por %p510_p8, %p509_p9 }
  0x3a   : > { %p512_p5 = pnand %p511_p4, %p505_p2 }
  0x3c   : > { %515 = shalt.err (!%p512_p5)
}
  0x3d   : > { %156 = dma.hbm_to_vmem [thread:$0]  (%p407_p0), %s728_s8, %s717_s29, %s154_s15, %s720_s3  }
  0x3e PF: > { %p875_p3 = scmp.ne.s32.totalorder %s871_s19, 0 }
  0x3f   : > { %s160_s6 = sand.u32 (%p875_p3), 1, %s618_s11   ;;  %s412_s7 = sshll.u32 (%p875_p3), %s626_s13, 2 }
  0x40   : > { %159 = sbr.rel (!%p875_p3) target bundleno = 98 (0x62), region = 24  ;;  %s411_s16 = sshll.u32 (%p875_p3), %s160_s6, 2 }
  0x41   : > { %s166_s18 = ssub.s32 (%p875_p3), 69, %s412_s7  ;;  %s758_s26 = scalar_lea.sflag (%p875_p3), [#allocation6], %s160_s6 }
  0x42   : > { %p167_p11 = scmp.lt.s32.totalorder (%p875_p3), %s166_s18, 4  ;;  %s164_s29 = scalar_lea.vmem (%p875_p3), [#allocation5], %s411_s16 }
  0x47   : > { %s889_s18 = smov (!%p167_p11, %s166_s18), 4 }
  0x48   : > { %s755_s20 = sshll.u32 %s889_s18, 4 }
  0x49   : > { %s171_s25 = ssub.s32 64, %s755_s20 }
  0x4a   : > { %172 = vsyncadd %s758_s26, %s171_s25  ;;  %p414_p4 = scmp.ne.s32.totalorder %s755_s20, 0  ;;  %s430_s19 = sshll.u32 %s626_s13, 6 }
  0x4b   : > { %s766_s15 = scalar_lea.hbm %s867_s1, %s430_s19  ;;  %s177_s27 = sshll.u32 %s164_s29, 4  ;;  %s178_s27 = int_to_ptr.vmem [resolvable:$true] %s177_s27 }
  0x4c   : > { %s516_s28 = scalar_lea.hbm %s766_s15, %s755_s20  ;;  %s520_s5 = scalar_lea.hbm %s867_s1, 1104 }
  0x4d   : > { %p517_p8 = scmp.ne.s32.totalorder %s766_s15, %s516_s28  ;;  %p521_p6 = scmp.lt.u32.totalorder %s766_s15, %s867_s1 }
  0x4e   : > { %p522_p7 = scmp.lt.u32.totalorder %s520_s5, %s516_s28  ;;  %p524_p12 = scmp.lt.u32.totalorder %s516_s28, %s766_s15 }
  0x4f   : > { %p518_p9 = pnand %p517_p8, %p414_p4 }
  0x50   : > { %p523_p10 = por %p522_p7, %p521_p6 }
  0x51   : > { %p519_p0 = pneg %p518_p9 }
  0x52   : > { %p525_p13 = por %p524_p12, %p523_p10 }
  0x54   : > { %p526_p1 = pnand %p525_p13, %p519_p0 }
  0x56   : > { %529 = shalt.err (!%p526_p1)
}
  0x57   : > { %s530_s16 = scalar_lea.vmem %s178_s27, %s755_s20  ;;  %s633_s18 = smov [#allocation5]  }
  0x58   : > { %p531_p2 = scmp.ne.s32.totalorder %s178_s27, %s530_s16  ;;  %s534_s25 = sshll.u32 %s633_s18, 4  ;;  %s535_s25 = int_to_ptr.vmem [resolvable:$false] %s534_s25 }
  0x59   : > { %s536_s29 = scalar_lea.vmem %s535_s25, 128  ;;  %p537_p11 = scmp.lt.s32.totalorder %s178_s27, %s535_s25 }
  0x5a   : > { %p532_p5 = pnand %p531_p2, %p414_p4  ;;  %p538_p8 = scmp.lt.s32.totalorder %s536_s29, %s530_s16 }
  0x5c   : > { %p533_p3 = pneg %p532_p5  ;;  %p539_p9 = por %p538_p8, %p537_p11 }
  0x5e   : > { %p540_p6 = pnand %p539_p9, %p533_p3 }
  0x60   : > { %543 = shalt.err (!%p540_p6)
}
  0x61   : > { %180 = dma.hbm_to_vmem [thread:$0]  (%p414_p4), %s766_s15, %s755_s20, %s178_s27, %s758_s26  }
  0x62 PF: > { %p416_p0 = scmp.ge.s32.totalorder %s630_s14, 1  ;;  %p182_p7 = scmp.lt.s32.totalorder %s630_s14, 19 }
  0x64   : > { %p183_p10 = pnand %p416_p0, %p182_p7 }
  0x65   : > { %s792_s19 = sand.u32 (!%p183_p10), 1, %s614_s10   ;;  %p876_p12 = scmp.ne.s32.totalorder (!%p183_p10), %s872_s21, 0 }
  0x66   : > { %186 = sbr.rel (%p183_p10) target bundleno = 153 (0x99), region = 28  ;;  %s417_s3 = sshll.u32 (!%p183_p10), %s792_s19, 4 }
  0x67   : > { %s189_s8 = scalar_lea.sflag (!%p183_p10), [#allocation3], %s792_s19  ;;  %s192_s28 = scalar_lea.vmem (!%p183_p10), [#allocation2], %s417_s3 }
  0x6d   : > { %597 = dma.done.wait (%p876_p12), %s189_s8, 256  }
  0x6e   : > { %599 = vsyncadd (%p876_p12), %s189_s8, 4294967040  ;;  %s418_s20 = sshll.u32 %s792_s19, 2  ;;  %s198_s26 = scalar_lea.sflag [#allocation6], %s792_s19 }
  0x6f   : > { %s201_s15 = scalar_lea.vmem [#allocation5], %s418_s20 }
  0x70   : > { %601 = dma.done.wait (%p876_p12), %s198_s26, 64  }
  0x71   : > { %603 = vsyncadd (%p876_p12), %s198_s26, 4294967232  ;;  %v246_v0 = vlaneseq  ;;  %v244_v6 = vld [vmem:[%s201_s15] sm:$0xf]  ;;  %v243_v12 = vld [vmem:[%s192_s28 + $0x8] sm:$0xff]  ;;  %s226_s21 = scalar_lea.vmem [#allocation7], %s417_s3  ;;  %s271_s27 = scalar_lea.sflag [#allocation4], %s792_s19 }
  0x72   : > { %v242_v11 = vld [vmem:[%s192_s28] sm:$0xff]  ;;  %p877_p4 = scmp.ne.s32.totalorder %s873_s22, 0 }
  0x73   : > { %v247_v1 = vshrl.u32 %v246_v0, 7  ;;  %s421_s30 = sshll.u32 (%p877_p4), %s622_s12, 2 }
  0x74   : > { %s279_s4 = ssub.s32 (%p877_p4), 69, %s421_s30 }
  0x75   : > { %v248_v2 = vsub.s32 0, %v247_v1  ;;  %v252_v3 = vsub.s32 1, %v247_v1  ;;  %v256_v4 = vsub.s32 2, %v247_v1  ;;  %v260_v5 = vsub.s32 3, %v247_v1  ;;  %p280_p13 = scmp.lt.s32.totalorder (%p877_p4), %s279_s4, 4 }
  0x77   : > { %v249_v7 = vrot.slane %v244_v6, %v248_v2  ;;  %v253_v8 = vrot.slane %v244_v6, %v252_v3  ;;  %v257_v9 = vrot.slane %v244_v6, %v256_v4  ;;  %v261_v10 = vrot.slane %v244_v6, %v260_v5  ;;  %277 = sbr.rel (!%p877_p4) target bundleno = 153 (0x99), region = 40 }
  0x79   : > { %v262_v13 = vcombine.low %v249_v7, %v253_v8  ;;  %v263_v14 = vcombine.low %v257_v9, %v261_v10 }
  0x7b   : > { %v266_v15 = vadd.f32 %v262_v13, %v242_v11  ;;  %v267_v16 = vadd.f32 %v263_v14, %v243_v12 }
  0x7d   : > { %268 = vst [vmem:[%s226_s21] sm:$0xff] %v266_v15  ;;  %269 = vst [vmem:[%s226_s21 + $0x8] sm:$0xff] %v267_v16 }
  0x7e   : > { %s891_s4 = smov (!%p280_p13, %s279_s4), 4 }
  0x7f   : > { %s810_s5 = sshll.u32 %s891_s4, 6 }
  0x80   : > { %s284_s6 = ssub.s32 256, %s810_s5 }
  0x81   : > { %285 = vsyncadd %s271_s27, %s284_s6  ;;  %p423_p1 = scmp.ne.s32.totalorder %s810_s5, 0  ;;  %s431_s7 = sshll.u32 %s622_s12, 8 }
  0x82   : > { %s820_s18 = scalar_lea.hbm %s868_s2, %s431_s7  ;;  %s293_s25 = sshll.u32 %s226_s21, 4  ;;  %s294_s25 = int_to_ptr.vmem [resolvable:$true] %s293_s25 }
  0x83   : > { %s544_s29 = scalar_lea.vmem %s294_s25, %s810_s5  ;;  %s634_s3 = smov [#allocation7]  }
  0x84   : > { %p545_p2 = scmp.ne.s32.totalorder %s294_s25, %s544_s29  ;;  %s548_s8 = sshll.u32 %s634_s3, 4  ;;  %s549_s8 = int_to_ptr.vmem [resolvable:$false] %s548_s8 }
  0x85   : > { %s550_s28 = scalar_lea.vmem %s549_s8, 512  ;;  %p551_p11 = scmp.lt.s32.totalorder %s294_s25, %s549_s8 }
  0x86   : > { %p546_p5 = pnand %p545_p2, %p423_p1  ;;  %p552_p8 = scmp.lt.s32.totalorder %s550_s28, %s544_s29 }
  0x88   : > { %p547_p3 = pneg %p546_p5  ;;  %p553_p9 = por %p552_p8, %p551_p11 }
  0x8a   : > { %p554_p6 = pnand %p553_p9, %p547_p3 }
  0x8c   : > { %557 = shalt.err (!%p554_p6)
}
  0x8d   : > { %s558_s12 = scalar_lea.hbm %s820_s18, %s810_s5  ;;  %s562_s15 = scalar_lea.hbm %s868_s2, 4416 }
  0x8e   : > { %p559_p0 = scmp.ne.s32.totalorder %s820_s18, %s558_s12  ;;  %p563_p12 = scmp.lt.u32.totalorder %s820_s18, %s868_s2 }
  0x8f   : > { %p564_p4 = scmp.lt.u32.totalorder %s562_s15, %s558_s12  ;;  %p566_p2 = scmp.lt.u32.totalorder %s558_s12, %s820_s18 }
  0x90   : > { %p560_p7 = pnand %p559_p0, %p423_p1 }
  0x91   : > { %p565_p13 = por %p564_p4, %p563_p12 }
  0x92   : > { %p561_p10 = pneg %p560_p7 }
  0x93   : > { %p567_p5 = por %p566_p2, %p565_p13 }
  0x95   : > { %p568_p3 = pnand %p567_p5, %p561_p10 }
  0x97   : > { %571 = shalt.err (!%p568_p3)
}
  0x98   : > { %296 = dma.vmem_to_hbm [thread:$0]  (%p423_p1), %s294_s25, %s810_s5, %s820_s18, %s271_s27  }
  0x99 PF: > { %p439_p11 = scmp.ge.s32.totalorder %s630_s14, 2  ;;  %s305_s4 = sand.u32 1, %s610_s9  }
  0x9a   : > { %p878_p8 = scmp.ne.s32.totalorder %s874_s24, 0  ;;  %s306_s6 = scalar_lea.sflag [#allocation4], %s305_s4 }
  0x9c   : > { %p436_p9 = pnand %p439_p11, %p878_p8 }
  0x9e   : > { %605 = dma.done.wait (!%p436_p9), %s306_s6, 256  }
  0x9f   : > { %607 = vsyncadd (!%p436_p9), %s306_s6, 4294967040  ;;  %s21_s14 = sadd.s32 1, %s630_s14   ;;  %s879_s9 = smov %s614_s10 }
  0xa0   : > { %p18_p6 = scmp.ge.s32.totalorder %s21_s14, 20   ;;  %s880_s10 = smov %s618_s11 }
  0xa1   : > { %s881_s11 = smov %s706_s23  ;;  %s882_s12 = smov %s626_s13 }
  0xa2   : > { %s883_s13 = smov %s885_s17  ;;  %20 = sbr.rel (!%p18_p6) target bundleno = 8 (0x8), region = 86 }
  0xa9   :  { %311 = vsyncpa [#allocation3], 1 }
  0xaa   :  { %313 = vsyncpa [#allocation3 + $0x1], 1 }
  0xab   :  { %314 = vsyncpa [#allocation6], 1 }
  0xac   :  { %316 = vsyncpa [#allocation6 + $0x1], 1 }
  0xad   :  { %317 = vsyncpa [#allocation4], 1 }
  0xae   :  { %319 = vsyncpa [#allocation4 + $0x1], 1 }

</bundles_post_ra>
